<compile_context>
chip_gen: v6e
topology: v6e:2x2x1
jax: 0.10.0
libtpu: 0.0.40
codegen_flags: <defaults>
</compile_context>

<pallas_src>
import jax
import jax.numpy as jnp
from jax.experimental import pallas as pl
from jax.experimental.pallas import tpu as pltpu  # noqa: F401  (TPU backend)

# ----- model hyper-parameters (small, consistent with the module) -----------
B, L, D, ENT = 2, 8, 32, 4          # batch, seq len, bert_dim, ent_num
D2 = 2 * D                          # bert_dim * 2 (NoneLinear input dim)
H = D2 // 2                         # NoneLinear hidden = input_dim / 2 (= 32)
ENT2 = ENT * 2                      # per-head type output width (= 8)
VOCAB = 64
M_TYPE = B * L                      # rows of the fused type MLP   (16)
M_PAIR = B * L * L                  # rows of the pairwise MLP     (128)
LANES = 128

# ----- packed weight-slab row offsets (all 8-aligned) ------------------------
R_WF = 0        # rows   0: 32  (D,128)   fused layer-1  [h | t | ht_a | ht_b]
R_W2T = 32      # rows  32:160  (128,128) type layer-2, block-diag, rows 64:128 = 0
R_HTW2 = 160    # rows 160:192  (H,128)   head_tail layer-2 (lanes 0:2)
R_WREL = 192    # rows 192:194  (2,H)     [rel_w @ w1s ; rel_b @ w1s + ht_b1]
R_TB1 = 200     # row  200      (1,128)   [h_b1 | t_b1 | 0]
R_TB2 = 208     # row  208      (1,128)   [h_b2 | t_b2 | 0]
R_B2 = 216      # row  216      (1,128)   [ht_b2 | 0]
SLAB_ROWS = 224


# ----------------------------------------------------------------------------
# Fused kernel: all three heads, one grid-less launch, 3 inputs, 1 output.
# ----------------------------------------------------------------------------
def _matix_fused_kernel(x_ref, rel_ref, w_ref, out_ref):
    x = x_ref[...]                                               # (16, 32)

    # One MXU pass for every layer-1 matmul (128 output lanes):
    #   lanes  0:32  = x @ (h_w1[:D] + h_w1[D:])
    #   lanes 32:64  = x @ (t_w1[:D] + t_w1[D:])
    #   lanes 64:96  = a  = x @ ht_w1[:D]
    #   lanes 96:128 = bm = x @ ht_w1[D:]
    xw = jnp.dot(x, w_ref[R_WF:R_WF + D, :],
                 preferred_element_type=jnp.float32)             # (16, 128)

    # ---- h_type / t_type heads (fused, block-diagonal layer-2) -------------
    # ReLU over all 128 lanes; lanes 64:128 hit zero layer-2 rows -> harmless.
    th = jnp.maximum(xw + w_ref[R_TB1:R_TB1 + 1, :], 0.0)        # (16, 128)
    types = (jnp.dot(th, w_ref[R_W2T:R_W2T + LANES, :],
                     preferred_element_type=jnp.float32)
             + w_ref[R_TB2:R_TB2 + 1, :])                        # (16, 128)
    out_ref[0:M_TYPE, :] = types                                 # full-lane store

    # ---- head_tail head (no (L,L,D) intermediates, 2-D hidden slab) --------
    a = xw[:, 2 * H:3 * H]                                       # (16, 32)
    bm = xw[:, 3 * H:4 * H]                                      # (16, 32)
    # rank-1 rel term + folded bias as a lane-resident K=2 MXU dot
    relbias = jnp.dot(rel_ref[...], w_ref[R_WREL:R_WREL + 2, 0:H],
                      preferred_element_type=jnp.float32)        # (128, 32)
    a_rep = jnp.broadcast_to(a.reshape(M_TYPE, 1, H),
                             (M_TYPE, L, H)).reshape(M_PAIR, H)
    b_rep = jnp.broadcast_to(bm.reshape(B, 1, L, H),
                             (B, L, L, H)).reshape(M_PAIR, H)
    hidden = jnp.maximum(a_rep + b_rep + relbias, 0.0)           # (128, 32)
    ht = (jnp.dot(hidden, w_ref[R_HTW2:R_HTW2 + H, :],
                  preferred_element_type=jnp.float32)
          + w_ref[R_B2:R_B2 + 1, :])                             # (128, 128)
    out_ref[M_TYPE:M_TYPE + M_PAIR, :] = ht                      # full-lane store


# ----------------------------------------------------------------------------
# Wrapper-side weight packing (exact algebraic folds of the module's math).
# ----------------------------------------------------------------------------
def pack_weight_slab(p):
    slab = jnp.zeros((SLAB_ROWS, LANES), jnp.float32)
    w1s_ht = p["ht_w1"][:D] + p["ht_w1"][D:]
    # cat(out, out) @ W1 == out @ (W1[:D] + W1[D:])
    wfused = jnp.concatenate(
        [p["h_w1"][:D] + p["h_w1"][D:],
         p["t_w1"][:D] + p["t_w1"][D:],
         p["ht_w1"][:D], p["ht_w1"][D:]], axis=1)                 # (D, 128)
    slab = slab.at[R_WF:R_WF + D, :].set(wfused)
    # block-diagonal fused type layer-2 (rows 64:128 stay zero)
    slab = slab.at[R_W2T:R_W2T + H, 0:ENT2].set(p["h_w2"])
    slab = slab.at[R_W2T + H:R_W2T + 2 * H, ENT2:2 * ENT2].set(p["t_w2"])
    # head_tail layer-2
    slab = slab.at[R_HTW2:R_HTW2 + H, 0:2].set(p["ht_w2"])
    # rel_linear folded through layer-1: rel*relv + bh
    slab = slab.at[R_WREL, 0:H].set((p["rel_w"] @ w1s_ht)[0])
    slab = slab.at[R_WREL + 1, 0:H].set((p["rel_b"] @ w1s_ht + p["ht_b1"])[0])
    # bias rows
    slab = slab.at[R_TB1, 0:2 * H].set(
        jnp.concatenate([p["h_b1"], p["t_b1"]], axis=1)[0])
    slab = slab.at[R_TB2, 0:2 * ENT2].set(
        jnp.concatenate([p["h_b2"], p["t_b2"]], axis=1)[0])
    slab = slab.at[R_B2, 0:2].set(p["ht_b2"][0])
    return slab


_COST = pl.CostEstimate(flops=1_760_000, transcendentals=0,
                        bytes_accessed=192_000)


def matix_fused(out, rel_pos, slab):
    x2d = out.reshape(M_TYPE, D)                                  # (16, 32)
    rel2d = rel_pos.reshape(M_PAIR, 1)                            # free in XLA
    rel_aug = jnp.concatenate([rel2d, jnp.ones_like(rel2d)], axis=1)  # (128, 2)

    packed = pl.pallas_call(
        _matix_fused_kernel,
        out_shape=jax.ShapeDtypeStruct((M_TYPE + M_PAIR, LANES), jnp.float32),
        cost_estimate=_COST,
    )(x2d, rel_aug, slab)

    types = packed[0:M_TYPE, 0:2 * ENT2]                          # (16, 16)
    h_type = types[:, 0:ENT2].reshape(B, L, ENT, 2)
    t_type = types[:, ENT2:2 * ENT2].reshape(B, L, ENT, 2)
    head_tail = packed[M_TYPE:, 0:2].reshape(B, L, L, 2)
    return h_type, t_type, head_tail


# ----------------------------------------------------------------------------
# Parameter init (deterministic) + forward + pure-JAX reference
# ----------------------------------------------------------------------------
def init_params(key):
    ks = jax.random.split(key, 16)
    n = lambda k, s: (0.02 * jax.random.normal(k, s, dtype=jnp.float32))
    return {
        "embed": n(ks[0], (VOCAB, D)),                 # BERT stand-in table
        "rel_w": n(ks[1], (1, D)),                     # nn.Linear(1, D) weight
        "rel_b": n(ks[2], (1, D)),                     # nn.Linear(1, D) bias
        # h_type NoneLinear
        "h_w1": n(ks[3], (D2, H)), "h_b1": n(ks[4], (1, H)),
        "h_w2": n(ks[5], (H, ENT2)), "h_b2": n(ks[6], (1, ENT2)),
        # t_type NoneLinear
        "t_w1": n(ks[7], (D2, H)), "t_b1": n(ks[8], (1, H)),
        "t_w2": n(ks[9], (H, ENT2)), "t_b2": n(ks[10], (1, ENT2)),
        # h_t NoneLinear
        "ht_w1": n(ks[11], (D2, H)), "ht_b1": n(ks[12], (1, H)),
        "ht_w2": n(ks[13], (H, 2)), "ht_b2": n(ks[14], (1, 2)),
    }


@jax.jit
def matix_model_forward(params, input_ids, attention_mask, rel_pos):
    # TODO(synk): full BERT encoder not translated; deterministic embedding
    # lookup used as a stand-in for bert(text, attention_mask)[0].
    del attention_mask
    out = params["embed"][input_ids]                   # (B, L, D)
    slab = pack_weight_slab(params)                    # one-time weight fold
    h_type, t_type, head_tail = matix_fused(out, rel_pos, slab)
    return {"h_type": h_type, "t_type": t_type, "head_tail": head_tail}


def matix_model_reference(params, input_ids, attention_mask, rel_pos):
    del attention_mask
    out = params["embed"][input_ids]                   # (B, L, D)
    rel_emb = rel_pos[..., None] * params["rel_w"][0] + params["rel_b"][0]
    ent1 = out[:, :, None, :] + rel_emb                # (B, L, L, D)
    ent2 = out[:, None, :, :] + rel_emb                # (B, L, L, D)
    et1_et2 = jnp.concatenate([ent1, ent2], axis=-1)   # (B, L, L, 2D)
    e2e = jnp.concatenate([out, out], axis=-1)         # (B, L, 2D)

    def mlp(x, w1, b1, w2, b2):
        return jnp.maximum(x @ w1 + b1[0], 0.0) @ w2 + b2[0]

    ht = mlp(e2e, params["h_w1"], params["h_b1"],
             params["h_w2"], params["h_b2"]).reshape(B, L, ENT, 2)
    tt = mlp(e2e, params["t_w1"], params["t_b1"],
             params["t_w2"], params["t_b2"]).reshape(B, L, ENT, 2)
    head_tail = mlp(et1_et2, params["ht_w1"], params["ht_b1"],
                    params["ht_w2"], params["ht_b2"]).reshape(B, L, L, 2)
    return {"h_type": ht, "t_type": tt, "head_tail": head_tail}


if __name__ == "__main__":
    key = jax.random.PRNGKey(0)
    k_param, k_ids, k_rel = jax.random.split(key, 3)

    params = init_params(k_param)
    input_ids = jax.random.randint(k_ids, (B, L), 0, VOCAB, dtype=jnp.int32)
    attention_mask = jnp.ones((B, L), dtype=jnp.int32)
    rel_pos = jax.random.normal(k_rel, (B, L, L), dtype=jnp.float32)

    res = matix_model_forward(params, input_ids, attention_mask, rel_pos)
    res = jax.tree_util.tree_map(jax.block_until_ready, res)

    ref = matix_model_reference(params, input_ids, attention_mask, rel_pos)
    for name in ("h_type", "t_type", "head_tail"):
        assert res[name].shape == ref[name].shape, name
        assert jnp.allclose(res[name], ref[name], rtol=1e-4, atol=1e-4), name

    print("KERNEL_OK")
</pallas_src>

<mosaic_0001>
module attributes {stable_mosaic.version = 11 : i64} {
  func.func @_matix_fused_kernel(%arg0: memref<16x32xf32, #tpu.memory_space<vmem>>, %arg1: memref<128x2xf32, #tpu.memory_space<vmem>>, %arg2: memref<224x128xf32, #tpu.memory_space<vmem>>, %arg3: memref<144x128xf32, #tpu.memory_space<vmem>>) attributes {dimension_semantics = [], scalar_prefetch = 0 : i64, scratch_operands = 0 : i64, tpu.core_type = #tpu.core_type<tc>} {
    %c0 = arith.constant 0 : index
    %c0_0 = arith.constant 0 : index
    %0 = vector.load %arg0[%c0, %c0_0] : memref<16x32xf32, #tpu.memory_space<vmem>>, vector<16x32xf32>
    %c0_1 = arith.constant 0 : index
    %c0_2 = arith.constant 0 : index
    %1 = vector.load %arg2[%c0_1, %c0_2] : memref<224x128xf32, #tpu.memory_space<vmem>>, vector<32x128xf32>
    %cst = arith.constant dense<0.000000e+00> : vector<16x128xf32>
    %2 = tpu.matmul %0, %1, %cst {dimension_numbers = #tpu.dot_dimension_numbers<[1], [0], [0], [1], [0, 0, 1, 1], [], []>} : vector<16x32xf32>, vector<32x128xf32>, vector<16x128xf32> -> vector<16x128xf32>
    %c200 = arith.constant 200 : index
    %c0_3 = arith.constant 0 : index
    %3 = vector.load %arg2[%c200, %c0_3] : memref<224x128xf32, #tpu.memory_space<vmem>>, vector<1x128xf32>
    %4 = vector.broadcast %3 : vector<1x128xf32> to vector<16x128xf32>
    %5 = arith.addf %2, %4 : vector<16x128xf32>
    %cst_4 = arith.constant 0.000000e+00 : f32
    %6 = vector.broadcast %cst_4 : f32 to vector<16x128xf32>
    %7 = arith.maximumf %5, %6 : vector<16x128xf32>
    %c32 = arith.constant 32 : index
    %c0_5 = arith.constant 0 : index
    %8 = vector.load %arg2[%c32, %c0_5] : memref<224x128xf32, #tpu.memory_space<vmem>>, vector<128x128xf32>
    %cst_6 = arith.constant dense<0.000000e+00> : vector<16x128xf32>
    %9 = tpu.matmul %7, %8, %cst_6 {dimension_numbers = #tpu.dot_dimension_numbers<[1], [0], [0], [1], [0, 0, 1, 1], [], []>} : vector<16x128xf32>, vector<128x128xf32>, vector<16x128xf32> -> vector<16x128xf32>
    %c208 = arith.constant 208 : index
    %c0_7 = arith.constant 0 : index
    %10 = vector.load %arg2[%c208, %c0_7] : memref<224x128xf32, #tpu.memory_space<vmem>>, vector<1x128xf32>
    %11 = vector.broadcast %10 : vector<1x128xf32> to vector<16x128xf32>
    %12 = arith.addf %9, %11 : vector<16x128xf32>
    %c0_8 = arith.constant 0 : index
    %c0_9 = arith.constant 0 : index
    %13 = vector.load %arg3[%c0_8, %c0_9] : memref<144x128xf32, #tpu.memory_space<vmem>>, vector<16x128xf32>
    tpu.vector_store %arg3[%c0_8, %c0_9], %12 {strides = array<i32>} : memref<144x128xf32, #tpu.memory_space<vmem>>, vector<16x128xf32>,
    %14 = vector.extract_strided_slice %2 {offsets = [0, 64], sizes = [16, 32], strides = [1, 1]} : vector<16x128xf32> to vector<16x32xf32>
    %15 = vector.extract_strided_slice %2 {offsets = [0, 96], sizes = [16, 32], strides = [1, 1]} : vector<16x128xf32> to vector<16x32xf32>
    %c0_10 = arith.constant 0 : index
    %c0_11 = arith.constant 0 : index
    %16 = vector.load %arg1[%c0_10, %c0_11] : memref<128x2xf32, #tpu.memory_space<vmem>>, vector<128x2xf32>
    %c192 = arith.constant 192 : index
    %c0_12 = arith.constant 0 : index
    %17 = vector.load %arg2[%c192, %c0_12] : memref<224x128xf32, #tpu.memory_space<vmem>>, vector<2x32xf32>
    %cst_13 = arith.constant dense<0.000000e+00> : vector<128x32xf32>
    %18 = tpu.matmul %16, %17, %cst_13 {dimension_numbers = #tpu.dot_dimension_numbers<[1], [0], [0], [1], [0, 0, 1, 1], [], []>} : vector<128x2xf32>, vector<2x32xf32>, vector<128x32xf32> -> vector<128x32xf32>
    %19 = vector.shape_cast %14 : vector<16x32xf32> to vector<16x1x32xf32>
    %20 = vector.shape_cast %19 : vector<16x1x32xf32> to vector<16x1x32xf32>
    %21 = vector.broadcast %20 : vector<16x1x32xf32> to vector<16x8x32xf32>
    %22 = vector.shape_cast %21 : vector<16x8x32xf32> to vector<128x32xf32>
    %23 = vector.shape_cast %15 : vector<16x32xf32> to vector<2x1x8x32xf32>
    %24 = vector.shape_cast %23 : vector<2x1x8x32xf32> to vector<2x1x8x32xf32>
    %25 = vector.broadcast %24 : vector<2x1x8x32xf32> to vector<2x8x8x32xf32>
    %26 = vector.shape_cast %25 : vector<2x8x8x32xf32> to vector<128x32xf32>
    %27 = arith.addf %22, %26 : vector<128x32xf32>
    %28 = arith.addf %27, %18 : vector<128x32xf32>
    %cst_14 = arith.constant 0.000000e+00 : f32
    %29 = vector.broadcast %cst_14 : f32 to vector<128x32xf32>
    %30 = arith.maximumf %28, %29 : vector<128x32xf32>
    %c160 = arith.constant 160 : index
    %c0_15 = arith.constant 0 : index
    %31 = vector.load %arg2[%c160, %c0_15] : memref<224x128xf32, #tpu.memory_space<vmem>>, vector<32x128xf32>
    %cst_16 = arith.constant dense<0.000000e+00> : vector<128x128xf32>
    %32 = tpu.matmul %30, %31, %cst_16 {dimension_numbers = #tpu.dot_dimension_numbers<[1], [0], [0], [1], [0, 0, 1, 1], [], []>} : vector<128x32xf32>, vector<32x128xf32>, vector<128x128xf32> -> vector<128x128xf32>
    %c216 = arith.constant 216 : index
    %c0_17 = arith.constant 0 : index
    %33 = vector.load %arg2[%c216, %c0_17] : memref<224x128xf32, #tpu.memory_space<vmem>>, vector<1x128xf32>
    %34 = vector.broadcast %33 : vector<1x128xf32> to vector<128x128xf32>
    %35 = arith.addf %32, %34 : vector<128x128xf32>
    %c16 = arith.constant 16 : index
    %c0_18 = arith.constant 0 : index
    %36 = vector.load %arg3[%c16, %c0_18] : memref<144x128xf32, #tpu.memory_space<vmem>>, vector<128x128xf32>
    tpu.vector_store %arg3[%c16, %c0_18], %35 {strides = array<i32>} : memref<144x128xf32, #tpu.memory_space<vmem>>, vector<128x128xf32>,
    return
  }
}

</mosaic_0001>

<bundles_post_ra>
// kernel: matix_model_forward.1
= control target key start
LH: loop header
LB: loop body
LE: loop exit
PB: predicated region body
PF: predicated region fallthrough
CT: control target
= control target key end

     0   :  { %vm20_vm0 = vcmask 261120   ;;  %vm275_vm1 = vcmask 1041408   ;;  %vm226_vm2 = vcmask 15360   ;;  %s1190_s7 = smov 96   ;;  %s1191_s8 = smov 64   ;;  %s1545_s2 = inlined_call_operand.vmem [shape: f32[224,128], index: 2, kind: input, shape index: {}]   ;;  %s1546_s0 = inlined_call_operand.vmem [shape: f32[16,32], index: 0, kind: input, shape index: {}]   ;;  %s1547_s1 = inlined_call_operand.vmem [shape: f32[128,2], index: 1, kind: input, shape index: {}]   ;;  %s1548_s3 = inlined_call_operand.vmem [shape: f32[144,128], index: 3, kind: output, shape index: {}]  }
   0x1   :  { %v19_v0 = vld [vmem:[%s1545_s2 + $0x18] sm:$0xff]  ;;  %v18_v1 = vld [vmem:[%s1545_s2 + $0x10] sm:$0xff]  ;;  %v14_v2 = vld [vmem:[%s1546_s0] sm:$0xff] }
   0x2   :  { %1075 = vmatprep.subr.mxu0 %v19_v0  ;;  %v17_v3 = vld [vmem:[%s1545_s2 + $0x8] sm:$0xff]  ;;  %1083 = vmatprep.mubr.msk.f32.mxu0 %vm20_vm0, %v14_v2  ;;  %v16_v4 = vld [vmem:[%s1545_s2] sm:$0xff]  ;;  %v126_v8 = vld [vmem:[%s1545_s2 + $0x98] sm:$0xff]  ;;  %v430_v2 = vlaneseq }
   0x3   :  { %1076 = vmatpush3.msra.mxu0 %v19_v0  ;;  %v15_v5 = vld [vmem:[%s1546_s0 + $0x8] sm:$0xff]  ;;  %v225_v6 = vld [vmem:[%s1545_s2 + $0xc0] sm:$0x3]  ;;  %1086 = vmatprep.subr.mxu1 %v126_v8  ;;  %v125_v9 = vld [vmem:[%s1545_s2 + $0x90] sm:$0xff]  ;;  %v1192_v0 = vmov 1966171168  }
   0x4   :  { %1077 = vmatprep.subr.mxu0 %v18_v1  ;;  %v209_v7 = vld [vmem:[%s1547_s1] sm:$0xff]  ;;  %v210_v10 = vld [vmem:[%s1547_s1 + $0x8] sm:$0xff]  ;;  %v211_v11 = vld [vmem:[%s1547_s1 + $0x10] sm:$0xff]  ;;  %1087 = vmatpush3.msra.mxu1 %v126_v8 }
   0x5   :  { %1078 = vmatpush3.msra.mxu0 %v18_v1  ;;  %v124_v12 = vld [vmem:[%s1545_s2 + $0x88] sm:$0xff]  ;;  %1088 = vmatprep.subr.mxu1 %v125_v9  ;;  %v123_v13 = vld [vmem:[%s1545_s2 + $0x80] sm:$0xff]  ;;  %v212_v14 = vld [vmem:[%s1547_s1 + $0x18] sm:$0xff]  ;;  %v428_v1 = vunpack.c.l.s4 %v1192_v0 }
   0x6   :  { %1079 = vmatprep.subr.mxu0 %v17_v3  ;;  %1089 = vmatpush3.msra.mxu1 %v125_v9  ;;  %v213_v15 = vld [vmem:[%s1547_s1 + $0x20] sm:$0xff]  ;;  %v122_v16 = vld [vmem:[%s1545_s2 + $0x78] sm:$0xff]  ;;  %v121_v17 = vld [vmem:[%s1545_s2 + $0x70] sm:$0xff] }
   0x7   :  { %1080 = vmatpush3.msra.mxu0 %v17_v3  ;;  %1090 = vmatprep.subr.mxu1 %v124_v12  ;;  %v214_v18 = vld [vmem:[%s1547_s1 + $0x28] sm:$0xff]  ;;  %v215_v19 = vld [vmem:[%s1547_s1 + $0x30] sm:$0xff]  ;;  %v119_v21 = vld [vmem:[%s1545_s2 + $0x60] sm:$0xff]  ;;  %v429_v3 = vunpack.c.0.s8 %v428_v1 }
   0x8   :  { %1081 = vmatprep.subr.mxu0 %v16_v4  ;;  %1091 = vmatpush3.msra.mxu1 %v124_v12  ;;  %v120_v20 = vld [vmem:[%s1545_s2 + $0x68] sm:$0xff]  ;;  %v216_v22 = vld [vmem:[%s1547_s1 + $0x38] sm:$0xff]  ;;  %v217_v23 = vld [vmem:[%s1547_s1 + $0x40] sm:$0xff] }
   0x9   :  { %1082 = vmatpush3.msra.mxu0 %v16_v4  ;;  %1092 = vmatprep.subr.mxu1 %v123_v13  ;;  %v118_v24 = vld [vmem:[%s1545_s2 + $0x58] sm:$0xff]  ;;  %v117_v25 = vld [vmem:[%s1545_s2 + $0x50] sm:$0xff]  ;;  %v218_v26 = vld [vmem:[%s1547_s1 + $0x48] sm:$0xff]  ;;  %v431_v4 = vshrl.u32 %v430_v2, 7 }
   0xa   :  { %1084 = vmatmul.mubr.msk.f32.vlgmr.msra.gmra.mxu0 %vm20_vm0, %v15_v5  ;;  %1121 = vmatprep.subr.msk.mxu0 %vm275_vm1, %v225_v6  ;;  %v219_v27 = vld [vmem:[%s1547_s1 + $0x50] sm:$0xff]  ;;  %v116_v28 = vld [vmem:[%s1545_s2 + $0x48] sm:$0xff]  ;;  %v115_v29 = vld [vmem:[%s1545_s2 + $0x40] sm:$0xff] }
   0xb   :  { %1122 = vmatpush3.msk.msra.mxu0 %vm275_vm1, %v225_v6  ;;  %1123 = vmatprep.mubr.msk.f32.mxu0 %vm226_vm2, %v209_v7  ;;  %v220_v30 = vld [vmem:[%s1547_s1 + $0x58] sm:$0xff]  ;;  %v221_v31 = vld [vmem:[%s1547_s1 + $0x60] sm:$0xff]  ;;  %v222_v32 = vld [vmem:[%s1547_s1 + $0x68] sm:$0xff]  ;;  %v1377_v5 = vsub.s32 %v429_v3, %v431_v4 }
   0xc   :  { %1093 = vmatpush3.msra.mxu1 %v123_v13  ;;  %v223_v33 = vld [vmem:[%s1547_s1 + $0x70] sm:$0xff]  ;;  %v224_v34 = vld [vmem:[%s1547_s1 + $0x78] sm:$0xff]  ;;  %v112_v37 = vld [vmem:[%s1545_s2 + $0x28] sm:$0xff]  ;;  %v1390_v13 = vsub.s32 0, %v431_v4 }
   0xd   :  { %1094 = vmatprep.subr.mxu1 %v122_v16  ;;  %v114_v35 = vld [vmem:[%s1545_s2 + $0x38] sm:$0xff]  ;;  %v113_v36 = vld [vmem:[%s1545_s2 + $0x30] sm:$0xff]  ;;  %v111_v38 = vld [vmem:[%s1545_s2 + $0x20] sm:$0xff] }
   0xe   :  { %1124 = vmatmul.mubr.msk.f32.vlgmr.msra.gmra.mxu0 %vm226_vm2, %v210_v10  ;;  %1095 = vmatpush3.msra.mxu1 %v122_v16  ;;  %v978_v40 = vld [vmem:[%s1545_s2 + $0xc8] ss:$0 sm:$0xff]  ;;  %v725_v62 = vld [vmem:[%s1545_s2 + $0xb8] sm:$0xff]  ;;  %v724_v63 = vld [vmem:[%s1545_s2 + $0xb0] sm:$0xff] }
   0xf   :  { %1126 = vmatprep.mubr.msk.f32.mxu0 %vm226_vm2, %v211_v11  ;;  %1096 = vmatprep.subr.mxu1 %v121_v17  ;;  %v723_v10 = vld [vmem:[%s1545_s2 + $0xa8] sm:$0xff]  ;;  %v722_v11 = vld [vmem:[%s1545_s2 + $0xa0] sm:$0xff] }
  0x10   :  { %1097 = vmatpush3.msra.mxu1 %v121_v17  ;;  %1147 = vmatprep.subr.mxu0 %v725_v62 }
  0x11   :  { %1098 = vmatprep.subr.mxu1 %v120_v20  ;;  %1148 = vmatpush3.msra.mxu0 %v725_v62 }
  0x12   :  { %1127 = vmatmul.mubr.msk.f32.gmra.mxu0 %vm226_vm2, %v212_v14  ;;  %1099 = vmatpush3.msra.mxu1 %v120_v20 }
  0x13   :  { %1129 = vmatprep.mubr.msk.f32.mxu0 %vm226_vm2, %v213_v15  ;;  %1100 = vmatprep.subr.mxu1 %v119_v21 }
  0x14   :  { %1101 = vmatpush3.msra.mxu1 %v119_v21  ;;  %1149 = vmatprep.subr.mxu0 %v724_v63 }
  0x15   :  { %1102 = vmatprep.subr.mxu1 %v118_v24  ;;  %1150 = vmatpush3.msra.mxu0 %v724_v63 }
  0x16   :  { %1130 = vmatmul.mubr.msk.f32.gmra.mxu0 %vm226_vm2, %v214_v18  ;;  %1103 = vmatpush3.msra.mxu1 %v118_v24 }
  0x17   :  { %1132 = vmatprep.mubr.msk.f32.mxu0 %vm226_vm2, %v215_v19  ;;  %1104 = vmatprep.subr.mxu1 %v117_v25 }
  0x18   :  { %1105 = vmatpush3.msra.mxu1 %v117_v25  ;;  %1151 = vmatprep.subr.mxu0 %v723_v10 }
  0x19   :  { %1106 = vmatprep.subr.mxu1 %v116_v28  ;;  %1152 = vmatpush3.msra.mxu0 %v723_v10 }
  0x1a   :  { %1133 = vmatmul.mubr.msk.f32.gmra.mxu0 %vm226_vm2, %v216_v22  ;;  %1107 = vmatpush3.msra.mxu1 %v116_v28 }
  0x1b   :  { %1135 = vmatprep.mubr.msk.f32.mxu0 %vm226_vm2, %v217_v23  ;;  %1108 = vmatprep.subr.mxu1 %v115_v29 }
  0x1c   :  { %1109 = vmatpush3.msra.mxu1 %v115_v29  ;;  %1153 = vmatprep.subr.mxu0 %v722_v11 }
  0x1d   :  { %1110 = vmatprep.subr.mxu1 %v114_v35  ;;  %1154 = vmatpush3.msra.mxu0 %v722_v11 }
  0x1e   :  { %1136 = vmatmul.mubr.msk.f32.gmra.mxu0 %vm226_vm2, %v218_v26  ;;  %1111 = vmatpush3.msra.mxu1 %v114_v35 }
  0x1f   :  { %1138 = vmatprep.mubr.msk.f32.mxu0 %vm226_vm2, %v219_v27  ;;  %1112 = vmatprep.subr.mxu1 %v113_v36 }
  0x20   :  { %1113 = vmatpush3.msra.mxu1 %v113_v36 }
  0x21   :  { %1114 = vmatprep.subr.mxu1 %v112_v37 }
  0x22   :  { %1139 = vmatmul.mubr.msk.f32.gmra.mxu0 %vm226_vm2, %v220_v30  ;;  %1115 = vmatpush3.msra.mxu1 %v112_v37 }
  0x23   :  { %1141 = vmatprep.mubr.msk.f32.mxu0 %vm226_vm2, %v221_v31  ;;  %1116 = vmatprep.subr.mxu1 %v111_v38 }
  0x24   :  { %1117 = vmatpush3.msra.mxu1 %v111_v38 }
  0x25   :  { %1179 = vmatprep.subr.mxu1 %v725_v62 }
  0x26   :  { %1142 = vmatmul.mubr.msk.f32.gmra.mxu0 %vm226_vm2, %v222_v32 }
  0x27   :  { %1144 = vmatprep.mubr.msk.f32.mxu0 %vm226_vm2, %v223_v33 }
  0x2a   :  { %1145 = vmatmul.mubr.msk.f32.gmra.mxu0 %vm226_vm2, %v224_v34 }
  0xca   :  { %v1348_v39 = vpop.f32.mrf.mxu0 }
  0xcb   :  { %606 = vrot.lane.b32.xlu1 %v1348_v39, %s1190_s7  ;;  %v108_v42 = vadd.f32 %v1348_v39, %v978_v40  ;;  %v482_v18 = vrot.slane %v1348_v39, %v1377_v5  ;;  %v475_v32 = vcombine.high %v1348_v39, %v1348_v39 }
  0xcc   :  { %v93_v41 = vpop.f32.mrf.mxu0 }
  0xcd   :  { %604 = vrot.lane.b32.xlu0 %v93_v41, %s1190_s7  ;;  %v107_v44 = vadd.f32 %v978_v40, %v93_v41  ;;  %v110_v47 = vmax.f32 %v108_v42, 0.0  ;;  %v433_v6 = vrot.slane %v93_v41, %v1377_v5  ;;  %v426_v7 = vcombine.high %v93_v41, %v93_v41 }
  0xce   :  { %v1125_v43 = vpop.f32.mrf.mxu0  ;;  %v490_v25 = vcombine.high %v482_v18, %v482_v18  ;;  %v498_v37 = vrot.slane %v482_v18, %v1377_v5  ;;  %v489_v41 = vrot.slane %v475_v32, %v1377_v5 }
  0xcf   :  { %v109_v46 = vmax.f32 %v107_v44, 0.0  ;;  %v441_v8 = vcombine.high %v433_v6, %v433_v6  ;;  %v440_v9 = vrot.slane %v426_v7, %v1377_v5  ;;  %v449_v17 = vrot.slane %v433_v6, %v1377_v5 }
  0xd0   :  { %v345_v45 = vpop.f32.mrf.mxu0  ;;  %v512_v36 = vrot.slane %v490_v25, %v1377_v5 }
  0xd1   :  { %644 = vrot.lane.b32.xlu0 %v1125_v43, %s1191_s8  ;;  %1118 = vmatprep.mubr.f32.mxu1 %v109_v46  ;;  %v1388_v12 = vrot.slane %v441_v8, %v1377_v5  ;;  %v442_v14 = vcombine.high %v440_v9, %v440_v9  ;;  %v527_v23 = vrot.slane %v449_v17, %v1390_v13 }
  0xd2   :  { %v1128_v48 = vpop.f32.mrf.mxu0  ;;  %1119 = vmatmul.mubr.f32.vlgmr.msra.gmra.mxu1 %v110_v47  ;;  %v1405_v24 = vrot.slane %v440_v9, %v1377_v5  ;;  %v563_v44 = vrot.slane %v512_v36, %v1390_v13  ;;  %v559_v47 = vrot.slane %v498_v37, %v1390_v13 }
  0xd3   :  { %1183 = vmatpush3.msra.mxu1 %v725_v62  ;;  %v531_v16 = vrot.slane %v1388_v12, %v1390_v13  ;;  %v1401_v20 = vrot.slane %v442_v14, %v1377_v5 }
  0xd4   :  { %v355_v49 = vpop.f32.mrf.mxu0  ;;  %1180 = vmatprep.subr.mxu1 %v724_v63  ;;  %v472_v31 = vcombine.high %v1405_v24, %v1405_v24 }
  0xd5   :  { %642 = vrot.lane.b32.xlu0 %v345_v45, %s1191_s8  ;;  %1184 = vmatpush3.msra.mxu1 %v724_v63  ;;  %v474_v28 = vcombine.high %v1401_v20, %v1401_v20  ;;  %v522_v45 = vcombine.high %v512_v36, %v512_v36 }
  0xd6   :  { %v1131_v50 = vpop.f32.mrf.mxu0  ;;  %1181 = vmatprep.subr.mxu1 %v723_v10  ;;  %v551_v40 = vrot.slane %v472_v31, %v1390_v13 }
  0xd7   :  { %1185 = vmatpush3.msra.mxu1 %v723_v10  ;;  %v555_v35 = vrot.slane %v474_v28, %v1390_v13 }
  0xd8   :  { %v365_v51 = vpop.f32.mrf.mxu0  ;;  %1182 = vmatprep.subr.mxu1 %v722_v11 }
  0xd9   :  { %1186 = vmatpush3.msra.mxu1 %v722_v11 }
  0xda   :  { %v1134_v52 = vpop.f32.mrf.mxu0 }
  0xdb   :  { %656 = vrot.lane.b32.xlu1 %v1134_v52, %s1191_s8 }
  0xdc   :  { %v375_v53 = vpop.f32.mrf.mxu0 }
  0xdd   :  { %654 = vrot.lane.b32.xlu0 %v375_v53, %s1191_s8  ;;  %v520_v53 = vcombine.high %v498_v37, %v498_v37 }
  0xde   :  { %v1137_v54 = vpop.f32.mrf.mxu0 }
  0xdf   :  { %660 = vrot.lane.b32.xlu1 %v1137_v54, %s1191_s8  ;;  %v491_v54 = vcombine.high %v489_v41, %v489_v41  ;;  %v567_v2 = vrot.slane %v520_v53, %v1390_v13 }
  0xe0   :  { %v385_v55 = vpop.f32.mrf.mxu0 }
  0xe1   :  { %658 = vrot.lane.b32.xlu0 %v385_v55, %s1191_s8  ;;  %v519_v7 = vrot.slane %v491_v54, %v1377_v5 }
  0xe2   :  { %v1140_v56 = vpop.f32.mrf.mxu0 }
  0xe3   :  { %664 = vrot.lane.b32.xlu1 %v1140_v56, %s1191_s8 }
  0xe4   :  { %v395_v57 = vpop.f32.mrf.mxu0 }
  0xe5   :  { %646 = vrot.lane.b32.xlu0 %v355_v49, %s1191_s8 }
  0xe6   :  { %v1143_v58 = vpop.f32.mrf.mxu0 }
  0xe7   :  { %662 = vrot.lane.b32.xlu1 %v395_v57, %s1191_s8 }
  0xe8   :  { %v405_v59 = vpop.f32.mrf.mxu0 }
  0xe9   :  { %648 = vrot.lane.b32.xlu0 %v1128_v48, %s1191_s8 }
  0xea   :  { %v1146_v60 = vpop.f32.mrf.mxu0 }
  0xeb   :  { %668 = vrot.lane.b32.xlu1 %v1143_v58, %s1191_s8  ;;  %v571_v58 = vrot.slane %v522_v45, %v1390_v13 }
  0xec   :  { %v415_v61 = vpop.f32.mrf.mxu0 }
  0xed   :  { %650 = vrot.lane.b32.xlu0 %v365_v51, %s1191_s8  ;;  %v471_v51 = vcombine.high %v449_v17, %v449_v17 }
  0xef   :  { %666 = vrot.lane.b32.xlu1 %v405_v59, %s1191_s8  ;;  %v535_v0 = vrot.slane %v471_v51, %v1390_v13 }
  0xf1   :  { %652 = vrot.lane.b32.xlu0 %v1131_v50, %s1191_s8 }
  0xf3   :  { %670 = vrot.lane.b32.xlu1 %v415_v61, %s1191_s8 }
  0xf7   :  { %672 = vrot.lane.b32.xlu1 %v1146_v60, %s1191_s8  ;;  %v473_v60 = vcombine.high %v1388_v12, %v1388_v12 }
  0xf9   :  { %v539_v12 = vrot.slane %v473_v60, %v1390_v13 }
 0x13d   :  { %v1415_v33 = vpop.permute.xlu1 %606 }
 0x13e   :  { %v619_v50 = vadd.f32 %v1415_v33, %v563_v44  ;;  %v618_v57 = vadd.f32 %v1415_v33, %v559_v47  ;;  %v621_v63 = vadd.f32 %v1415_v33, %v571_v58  ;;  %v620_v11 = vadd.f32 %v1415_v33, %v567_v2 }
 0x13f   :  { %v1392_v15 = vpop.permute.xlu0 %604 }
 0x140   :  { %v611_v19 = vadd.f32 %v1392_v15, %v531_v16  ;;  %v610_v27 = vadd.f32 %v1392_v15, %v527_v23  ;;  %v617_v38 = vadd.f32 %v1392_v15, %v555_v35  ;;  %v616_v39 = vadd.f32 %v1392_v15, %v551_v40 }
 0x141   :  { %v612_v6 = vadd.f32 %v1392_v15, %v535_v0  ;;  %v505_v16 = vrot.slane %v489_v41, %v1377_v5  ;;  %v523_v40 = vcombine.high %v519_v7, %v519_v7 }
 0x143   :  { %v645_v21 = vpop.permute.xlu0 %644  ;;  %v575_v5 = vrot.slane %v505_v16, %v1390_v13  ;;  %v521_v32 = vcombine.high %v505_v16, %v505_v16 }
 0x144   :  { %v691_v22 = vadd.f32 %v645_v21, %v611_v19  ;;  %v613_v19 = vadd.f32 %v1392_v15, %v539_v12  ;;  %v579_v21 = vrot.slane %v519_v7, %v1390_v13 }
 0x145   :  { %v622_v37 = vadd.f32 %v1415_v33, %v575_v5 }
 0x146   :  { %v707_v26 = vmax.f32 %v691_v22, 0.0 }
 0x147   :  { %v643_v29 = vpop.permute.xlu0 %642 }
 0x148   :  { %v690_v30 = vadd.f32 %v643_v29, %v610_v27  ;;  %749 = vrot.lane.b32.xlu0 %v707_v26, %s1191_s8  ;;  %v623_v26 = vadd.f32 %v1415_v33, %v579_v21  ;;  %v543_v27 = vrot.slane %v1405_v24, %v1390_v13  ;;  %v547_v24 = vrot.slane %v1401_v20, %v1390_v13 }
 0x14a   :  { %v706_v34 = vmax.f32 %v690_v30, 0.0  ;;  %v614_v31 = vadd.f32 %v1392_v15, %v543_v27 }
 0x14c   :  { %747 = vrot.lane.b32.xlu0 %v706_v34, %s1191_s8 }
 0x14d   :  { %v657_v42 = vpop.permute.xlu1 %656 }
 0x14e   :  { %v697_v43 = vadd.f32 %v657_v42, %v617_v38 }
 0x14f   :  { %v655_v46 = vpop.permute.xlu0 %654 }
 0x150   :  { %v713_v48 = vmax.f32 %v697_v43, 0.0  ;;  %v696_v49 = vadd.f32 %v655_v46, %v616_v39  ;;  %v615_v43 = vadd.f32 %v1392_v15, %v547_v24  ;;  %v583_v39 = vrot.slane %v521_v32, %v1390_v13 }
 0x151   :  { %v661_v52 = vpop.permute.xlu1 %660 }
 0x152   :  { %v712_v55 = vmax.f32 %v696_v49, 0.0  ;;  %v699_v56 = vadd.f32 %v661_v52, %v619_v50  ;;  %761 = vrot.lane.b32.xlu1 %v713_v48, %s1191_s8  ;;  %v624_v47 = vadd.f32 %v1415_v33, %v583_v39  ;;  %v587_v50 = vrot.slane %v523_v40, %v1390_v13 }
 0x153   :  { %v659_v59 = vpop.permute.xlu0 %658 }
 0x154   :  { %v715_v61 = vmax.f32 %v699_v56, 0.0  ;;  %v698_v62 = vadd.f32 %v659_v59, %v618_v57  ;;  %759 = vrot.lane.b32.xlu0 %v712_v55, %s1191_s8  ;;  %v625_v15 = vadd.f32 %v1415_v33, %v587_v50  ;;  %v979_v55 = vld [vmem:[%s1545_s2 + $0xd0] ss:$0 sm:$0xff] }
 0x155   :  { %v665_v1 = vpop.permute.xlu1 %664 }
 0x156   :  { %v714_v3 = vmax.f32 %v698_v62, 0.0  ;;  %v701_v4 = vadd.f32 %v665_v1, %v621_v63  ;;  %765 = vrot.lane.b32.xlu1 %v715_v61, %s1191_s8 }
 0x157   :  { %v647_v8 = vpop.permute.xlu0 %646 }
 0x158   :  { %v717_v9 = vmax.f32 %v701_v4, 0.0  ;;  %v692_v10 = vadd.f32 %v647_v8, %v612_v6  ;;  %763 = vrot.lane.b32.xlu0 %v714_v3, %s1191_s8 }
 0x159   :  { %v663_v14 = vpop.permute.xlu1 %662 }
 0x15a   :  { %v708_v17 = vmax.f32 %v692_v10, 0.0  ;;  %v700_v18 = vadd.f32 %v663_v14, %v620_v11  ;;  %769 = vrot.lane.b32.xlu1 %v717_v9, %s1191_s8  ;;  %v997_v11 = vld [vmem:[%s1545_s2 + $0xd8] ss:$0 sm:$0xff] }
 0x15b   :  { %v649_v22 = vpop.permute.xlu0 %648 }
 0x15c   :  { %v716_v23 = vmax.f32 %v700_v18, 0.0  ;;  %v693_v25 = vadd.f32 %v649_v22, %v613_v19  ;;  %751 = vrot.lane.b32.xlu0 %v708_v17, %s1191_s8 }
 0x15d   :  { %v669_v28 = vpop.permute.xlu1 %668 }
 0x15e   :  { %v709_v29 = vmax.f32 %v693_v25, 0.0  ;;  %v703_v30 = vadd.f32 %v669_v28, %v623_v26  ;;  %767 = vrot.lane.b32.xlu1 %v716_v23, %s1191_s8 }
 0x15f   :  { %v651_v34 = vpop.permute.xlu0 %650 }
 0x160   :  { %v719_v35 = vmax.f32 %v703_v30, 0.0  ;;  %v694_v36 = vadd.f32 %v651_v34, %v614_v31  ;;  %753 = vrot.lane.b32.xlu0 %v709_v29, %s1191_s8 }
 0x161   :  { %v667_v38 = vpop.permute.xlu1 %666 }
 0x162   :  { %v710_v41 = vmax.f32 %v694_v36, 0.0  ;;  %v702_v42 = vadd.f32 %v667_v38, %v622_v37  ;;  %773 = vrot.lane.b32.xlu1 %v719_v35, %s1191_s8 }
 0x163   :  { %v653_v44 = vpop.permute.xlu0 %652 }
 0x164   :  { %v718_v45 = vmax.f32 %v702_v42, 0.0  ;;  %v695_v46 = vadd.f32 %v653_v44, %v615_v43  ;;  %755 = vrot.lane.b32.xlu0 %v710_v41, %s1191_s8 }
 0x165   :  { %v671_v48 = vpop.permute.xlu1 %670 }
 0x166   :  { %v711_v49 = vmax.f32 %v695_v46, 0.0  ;;  %v704_v20 = vadd.f32 %v671_v48, %v624_v47  ;;  %771 = vrot.lane.b32.xlu1 %v718_v45, %s1191_s8 }
 0x168   :  { %v720_v51 = vmax.f32 %v704_v20, 0.0  ;;  %757 = vrot.lane.b32.xlu0 %v711_v49, %s1191_s8 }
 0x169   :  { %v673_v52 = vpop.permute.xlu1 %672 }
 0x16a   :  { %v705_v53 = vadd.f32 %v673_v52, %v625_v15  ;;  %775 = vrot.lane.b32.xlu1 %v720_v51, %s1191_s8 }
 0x16c   :  { %v721_v54 = vmax.f32 %v705_v53, 0.0 }
 0x16e   :  { %777 = vrot.lane.b32.xlu1 %v721_v54, %s1191_s8 }
 0x192   :  { %v1120_v56 = vpop.f32.mrf.mxu1 }
 0x193   :  { %v204_v57 = vadd.f32 %v1120_v56, %v979_v55 }
 0x194   :  { %v198_v58 = vpop.f32.mrf.mxu1 }
 0x195   :  { %208 = vst [vmem:[%s1548_s3 + $0x8] sm:$0xff] %v204_v57  ;;  %v199_v13 = vadd.f32 %v979_v55, %v198_v58 }
 0x197   :  { %207 = vst [vmem:[%s1548_s3] sm:$0xff] %v199_v13 }
 0x1ba   :  { %v750_v33 = vpop.permute.xlu0 %749 }
 0x1be   :  { %v748_v59 = vpop.permute.xlu0 %747 }
 0x1bf   :  { %1155 = vmatprep.mubr.msk.f32.mxu0 %vm20_vm0, %v748_v59 }
 0x1c0   :  { %1156 = vmatmul.mubr.msk.f32.vlgmr.msra.gmra.mxu0 %vm20_vm0, %v750_v33 }
 0x1c4   :  { %v762_v60 = vpop.permute.xlu1 %761 }
 0x1c6   :  { %v760_v61 = vpop.permute.xlu0 %759 }
 0x1c7   :  { %1164 = vmatprep.mubr.msk.f32.mxu1 %vm20_vm0, %v760_v61 }
 0x1c8   :  { %v766_v62 = vpop.permute.xlu1 %765  ;;  %1165 = vmatmul.mubr.msk.f32.vlgmr.msra.gmra.mxu1 %vm20_vm0, %v762_v60 }
 0x1ca   :  { %v764_v63 = vpop.permute.xlu0 %763 }
 0x1cb   :  { %1167 = vmatprep.mubr.msk.f32.mxu1 %vm20_vm0, %v764_v63 }
 0x1cc   :  { %v770_v0 = vpop.permute.xlu1 %769  ;;  %1168 = vmatmul.mubr.msk.f32.gmra.mxu1 %vm20_vm0, %v766_v62 }
 0x1ce   :  { %v752_v1 = vpop.permute.xlu0 %751 }
 0x1cf   :  { %1158 = vmatprep.mubr.msk.f32.mxu0 %vm20_vm0, %v752_v1 }
 0x1d0   :  { %v768_v2 = vpop.permute.xlu1 %767 }
 0x1d1   :  { %1170 = vmatprep.mubr.msk.f32.mxu1 %vm20_vm0, %v768_v2 }
 0x1d2   :  { %v754_v3 = vpop.permute.xlu0 %753  ;;  %1171 = vmatmul.mubr.msk.f32.gmra.mxu1 %vm20_vm0, %v770_v0 }
 0x1d3   :  { %1159 = vmatmul.mubr.msk.f32.gmra.mxu0 %vm20_vm0, %v754_v3 }
 0x1d4   :  { %v774_v4 = vpop.permute.xlu1 %773 }
 0x1d6   :  { %v756_v6 = vpop.permute.xlu0 %755 }
 0x1d7   :  { %1161 = vmatprep.mubr.msk.f32.mxu0 %vm20_vm0, %v756_v6 }
 0x1d8   :  { %v772_v7 = vpop.permute.xlu1 %771 }
 0x1d9   :  { %1173 = vmatprep.mubr.msk.f32.mxu1 %vm20_vm0, %v772_v7 }
 0x1da   :  { %v758_v8 = vpop.permute.xlu0 %757  ;;  %1174 = vmatmul.mubr.msk.f32.gmra.mxu1 %vm20_vm0, %v774_v4 }
 0x1db   :  { %1162 = vmatmul.mubr.msk.f32.gmra.mxu0 %vm20_vm0, %v758_v8 }
 0x1dc   :  { %v776_v9 = vpop.permute.xlu1 %775 }
 0x1dd   :  { %1176 = vmatprep.mubr.msk.f32.mxu1 %vm20_vm0, %v776_v9 }
 0x1e0   :  { %v778_v10 = vpop.permute.xlu1 %777 }
 0x1e1   :  { %1177 = vmatmul.mubr.msk.f32.gmra.mxu1 %vm20_vm0, %v778_v10 }
 0x280   :  { %v1157_v12 = vpop.f32.mrf.mxu0 }
 0x281   :  { %v883_v14 = vadd.f32 %v1157_v12, %v997_v11 }
 0x282   :  { %v877_v16 = vpop.f32.mrf.mxu0 }
 0x283   :  { %957 = vst [vmem:[%s1548_s3 + $0x18] sm:$0xff] %v883_v14  ;;  %v878_v17 = vadd.f32 %v997_v11, %v877_v16 }
 0x285   :  { %956 = vst [vmem:[%s1548_s3 + $0x10] sm:$0xff] %v878_v17 }
 0x288   :  { %v1166_v18 = vpop.f32.mrf.mxu1 }
 0x289   :  { %v913_v19 = vadd.f32 %v1166_v18, %v997_v11 }
 0x28a   :  { %v907_v21 = vpop.f32.mrf.mxu1 }
 0x28b   :  { %963 = vst [vmem:[%s1548_s3 + $0x48] sm:$0xff] %v913_v19  ;;  %v908_v22 = vadd.f32 %v997_v11, %v907_v21 }
 0x28c   :  { %v1169_v23 = vpop.f32.mrf.mxu1 }
 0x28d   :  { %962 = vst [vmem:[%s1548_s3 + $0x40] sm:$0xff] %v908_v22  ;;  %v923_v25 = vadd.f32 %v1169_v23, %v997_v11 }
 0x28e   :  { %v917_v26 = vpop.f32.mrf.mxu1 }
 0x28f   :  { %965 = vst [vmem:[%s1548_s3 + $0x58] sm:$0xff] %v923_v25  ;;  %v918_v27 = vadd.f32 %v997_v11, %v917_v26 }
 0x291   :  { %964 = vst [vmem:[%s1548_s3 + $0x50] sm:$0xff] %v918_v27 }
 0x292   :  { %v1172_v28 = vpop.f32.mrf.mxu1 }
 0x293   :  { %v933_v5 = vadd.f32 %v1172_v28, %v997_v11  ;;  %v1160_v29 = vpop.f32.mrf.mxu0 }
 0x294   :  { %v893_v30 = vadd.f32 %v1160_v29, %v997_v11  ;;  %v927_v31 = vpop.f32.mrf.mxu1 }
 0x295   :  { %967 = vst [vmem:[%s1548_s3 + $0x68] sm:$0xff] %v933_v5  ;;  %v928_v32 = vadd.f32 %v997_v11, %v927_v31  ;;  %v887_v34 = vpop.f32.mrf.mxu0 }
 0x296   :  { %959 = vst [vmem:[%s1548_s3 + $0x28] sm:$0xff] %v893_v30  ;;  %v888_v35 = vadd.f32 %v997_v11, %v887_v34 }
 0x297   :  { %966 = vst [vmem:[%s1548_s3 + $0x60] sm:$0xff] %v928_v32 }
 0x298   :  { %958 = vst [vmem:[%s1548_s3 + $0x20] sm:$0xff] %v888_v35 }
 0x29a   :  { %v1175_v36 = vpop.f32.mrf.mxu1 }
 0x29b   :  { %v943_v37 = vadd.f32 %v1175_v36, %v997_v11  ;;  %v1163_v24 = vpop.f32.mrf.mxu0 }
 0x29c   :  { %v903_v38 = vadd.f32 %v1163_v24, %v997_v11  ;;  %v937_v40 = vpop.f32.mrf.mxu1 }
 0x29d   :  { %969 = vst [vmem:[%s1548_s3 + $0x78] sm:$0xff] %v943_v37  ;;  %v938_v41 = vadd.f32 %v997_v11, %v937_v40  ;;  %v897_v42 = vpop.f32.mrf.mxu0 }
 0x29e   :  { %961 = vst [vmem:[%s1548_s3 + $0x38] sm:$0xff] %v903_v38  ;;  %v898_v43 = vadd.f32 %v997_v11, %v897_v42 }
 0x29f   :  { %968 = vst [vmem:[%s1548_s3 + $0x70] sm:$0xff] %v938_v41 }
 0x2a0   :  { %960 = vst [vmem:[%s1548_s3 + $0x30] sm:$0xff] %v898_v43 }
 0x2a1   :  { %v1178_v39 = vpop.f32.mrf.mxu1 }
 0x2a2   :  { %v953_v44 = vadd.f32 %v1178_v39, %v997_v11 }
 0x2a3   :  { %v947_v45 = vpop.f32.mrf.mxu1 }
 0x2a4   :  { %971 = vst [vmem:[%s1548_s3 + $0x88] sm:$0xff] %v953_v44  ;;  %v948_v46 = vadd.f32 %v997_v11, %v947_v45 }
 0x2a6   :  { %970 = vst [vmem:[%s1548_s3 + $0x80] sm:$0xff] %v948_v46 }

</bundles_post_ra>
